<compile_context>
chip_gen: v5e
topology: v5e:2x2
jax: 0.10.0
libtpu: 0.0.40
codegen_flags: <defaults>
</compile_context>

<pallas_src>
import functools

import jax
import jax.numpy as jnp
from jax.experimental import pallas as pl
from jax.experimental.pallas import tpu as pltpu


def _word_dropout_kernel(seed_ref, x_ref, o_ref, *, thr, tile_n, k, h_shift):
    """One (tile_n, W) row tile.  k words are packed per row (W == k*H if k > 1)."""
    i = pl.program_id(0)
    base = i * tile_n                                # first (packed) row of this tile
    seed_u = seed_ref[0].astype(jnp.uint32)

    if k == 1:
        # One keep decision per row; broadcast over the hidden dim by the select.
        row = jax.lax.broadcasted_iota(jnp.int32, (tile_n, 1), 0) + base
    else:
        # Packed narrow-H path: lane l of packed row r holds word r*k + (l >> log2(H)).
        # The hash is computed lane-dense over the full (tile_n, 128) tile, so the
        # mask feeds the select directly with no lane->sublane relayout.
        shape = (tile_n, x_ref.shape[-1])
        prow = jax.lax.broadcasted_iota(jnp.int32, shape, 0) + base
        seg = jax.lax.broadcasted_iota(jnp.int32, shape, 1) >> h_shift
        row = prow * k + seg

    # Counter-based hash of (seed, word index): splitmix32-style, trimmed to two
    # multiply rounds.  Mask depends only on (seed, global word index), so it is
    # identical regardless of tiling or packing.
    u = row.astype(jnp.uint32) * jnp.uint32(0x9E3779B1) + seed_u * jnp.uint32(0x85EBCA77)
    u = u ^ (u >> 16)
    u = u * jnp.uint32(0x7FEB352D)
    u = u ^ (u >> 15)
    u = u * jnp.uint32(0x846CA68B)

    # Keep iff u >= thr  =>  P(drop) = thr / 2**32 ~= droprate.  Pure uint compare,
    # then a single broadcasted select (no float path, no mask-dtype cast).
    keep = u >= jnp.uint32(thr)
    o_ref[...] = jnp.where(keep, x_ref[...], jnp.zeros((), x_ref.dtype))


def _choose_tile_n(n_rows, row_bytes, itemsize):
    """Row-tile targeting ~8 MiB per buffer; clamped only by the byte target / n_rows."""
    target_bytes = 8 * 1024 * 1024          # ~2.5 us/step even at v7x's ~3.2 TB/s
    tile = target_bytes // max(1, row_bytes)
    align = max(8, 32 // max(1, itemsize))  # sublane pack: 8 f32, 16 bf16, 32 int8
    tile = max(align, (int(tile) // align) * align)
    if tile >= n_rows:
        return n_rows                       # full extent is always a legal block
    return tile


def word_dropout(x, seed, droprate=0.05, training=True):
    """Pallas WordDropout.forward: zero whole (b, t) rows of x with prob droprate."""
    if (not training) or droprate == 0.0:
        return x
    if droprate >= 1.0:
        return jnp.zeros_like(x)

    B, T, H = x.shape
    N = B * T
    itemsize = jnp.dtype(x.dtype).itemsize

    # Lane-dense packing for narrow hidden sizes: k consecutive words per
    # 128-lane row (contiguous reshape, no data movement).
    k = 1
    if 0 < H < 128 and (H & (H - 1)) == 0:
        k_cand = 128 // H
        if N % k_cand == 0:
            k = k_cand
    # TODO(synk): non-power-of-two H < 128 still takes the unpacked path
    # (masked partial stores); could pad H or pack to a multiple of 128.

    Np = N // k
    W = H * k
    x2 = x.reshape(Np, W)

    # Note: seed must fit in int32 (it is hashed with the word index in-kernel).
    seed_arr = jnp.asarray([seed], dtype=jnp.int32)
    thr = min(max(int(round(float(droprate) * 4294967296.0)), 0), 0xFFFFFFFF)
    h_shift = H.bit_length() - 1 if k > 1 else 0

    tile_n = _choose_tile_n(Np, W * itemsize, itemsize)
    grid = (pl.cdiv(Np, tile_n),)

    out2 = pl.pallas_call(
        functools.partial(
            _word_dropout_kernel, thr=thr, tile_n=tile_n, k=k, h_shift=h_shift
        ),
        out_shape=jax.ShapeDtypeStruct((Np, W), x.dtype),
        grid=grid,
        in_specs=[
            pl.BlockSpec(memory_space=pltpu.MemorySpace.SMEM),   # seed scalar
            pl.BlockSpec((tile_n, W), lambda i: (i, 0)),         # x row tile
            # (Optional: pipeline_mode=pl.Buffered(3) on the x spec if xprof
            # shows exposed DMA on v7x; double-buffering is enough for a
            # pure-streaming kernel.)
        ],
        out_specs=pl.BlockSpec((tile_n, W), lambda i: (i, 0)),
        compiler_params=pltpu.CompilerParams(
            # TODO(synk): confirm on v7x xprof that the "parallel" axis shards
            # tiles across both TensorCores; if not, add an explicit core axis.
            dimension_semantics=("parallel",),
            vmem_limit_bytes=48 * 1024 * 1024,
        ),
    )(seed_arr, x2)

    return out2.reshape(B, T, H)


if __name__ == "__main__":
    import numpy as np

    key = jax.random.PRNGKey(0)
    droprate = 0.25
    seed = 1234

    def check(B, T, H):
        kx = jax.random.fold_in(key, H)
        x = jax.random.normal(kx, (B, T, H), dtype=jnp.float32)
        y = jax.block_until_ready(word_dropout(x, seed=seed, droprate=droprate))
        xn, yn = jax.device_get(x), jax.device_get(y)

        # Each (b, t) row is either exactly x[b, t] or exactly zero.
        row_kept = np.abs(yn).sum(axis=-1) > 0
        for b in range(B):
            for t in range(T):
                if row_kept[b, t]:
                    assert np.allclose(yn[b, t], xn[b, t]), "kept row was modified"
                else:
                    assert np.all(yn[b, t] == 0.0), "dropped row not fully zeroed"

        # Determinism: same seed -> same mask.
        y2 = jax.block_until_ready(word_dropout(x, seed=seed, droprate=droprate))
        assert np.array_equal(jax.device_get(y2), yn), "same seed should reproduce mask"

        # Eval mode / zero droprate: identity.
        assert np.allclose(
            jax.device_get(word_dropout(x, seed, droprate, training=False)), xn
        )
        assert np.allclose(jax.device_get(word_dropout(x, seed, 0.0, True)), xn)
        return row_kept

    B, T = 2, 8
    kept_narrow = check(B, T, 32)     # packed lane-dense path (k = 4, W = 128)
    kept_wide = check(B, T, 128)      # unpacked path (k = 1)

    # Mask depends only on (seed, word index) -> identical pattern across H / packing.
    assert np.array_equal(kept_narrow, kept_wide), "mask should not depend on H"

    print("KERNEL_OK")
</pallas_src>

<mosaic_0001>
module attributes {stable_mosaic.version = 11 : i64} {
  func.func @_word_dropout_kernel(%arg0: i32, %arg1: memref<1xi32, #tpu.memory_space<smem>>, %arg2: memref<4x128xf32, #tpu.memory_space<vmem>>, %arg3: memref<4x128xf32, #tpu.memory_space<vmem>>) attributes {dimension_semantics = [#tpu.dimension_semantics<parallel>], iteration_bounds = array<i64: 1>, scalar_prefetch = 0 : i64, scratch_operands = 0 : i64, tpu.core_type = #tpu.core_type<tc>, window_params = [{transform_indices = @transform_0, window_bounds = array<i64: 1>}, {transform_indices = @transform_1, window_bounds = array<i64: 4, 128>}, {transform_indices = @transform_2, window_bounds = array<i64: 4, 128>}]} {
    %c4_i32 = arith.constant 4 : i32
    %0 = arith.muli %arg0, %c4_i32 : i32
    %c0 = arith.constant 0 : index
    %1 = memref.load %arg1[%c0] : memref<1xi32, #tpu.memory_space<smem>>
    %2 = tpu.iota {dimensions = array<i32: 0>} : vector<4x128xi32>
    %3 = vector.broadcast %0 : i32 to vector<4x128xi32>
    %4 = arith.addi %2, %3 : vector<4x128xi32>
    %5 = tpu.iota {dimensions = array<i32: 1>} : vector<4x128xi32>
    %c5_i32 = arith.constant 5 : i32
    %6 = vector.broadcast %c5_i32 : i32 to vector<4x128xi32>
    %7 = arith.shrsi %5, %6 : vector<4x128xi32>
    %c4_i32_0 = arith.constant 4 : i32
    %8 = vector.broadcast %c4_i32_0 : i32 to vector<4x128xi32>
    %9 = arith.muli %4, %8 : vector<4x128xi32>
    %10 = arith.addi %9, %7 : vector<4x128xi32>
    %c-1640531535_i32 = arith.constant -1640531535 : i32
    %11 = vector.broadcast %c-1640531535_i32 : i32 to vector<4x128xi32>
    %12 = arith.muli %10, %11 : vector<4x128xi32>
    %c-2048144777_i32 = arith.constant -2048144777 : i32
    %13 = arith.muli %1, %c-2048144777_i32 : i32
    %14 = vector.broadcast %13 : i32 to vector<4x128xi32>
    %15 = arith.addi %12, %14 : vector<4x128xi32>
    %c16_i32 = arith.constant 16 : i32
    %16 = vector.broadcast %c16_i32 : i32 to vector<4x128xi32>
    %17 = arith.shrui %15, %16 : vector<4x128xi32>
    %18 = arith.xori %15, %17 : vector<4x128xi32>
    %c2146121005_i32 = arith.constant 2146121005 : i32
    %19 = vector.broadcast %c2146121005_i32 : i32 to vector<4x128xi32>
    %20 = arith.muli %18, %19 : vector<4x128xi32>
    %c15_i32 = arith.constant 15 : i32
    %21 = vector.broadcast %c15_i32 : i32 to vector<4x128xi32>
    %22 = arith.shrui %20, %21 : vector<4x128xi32>
    %23 = arith.xori %20, %22 : vector<4x128xi32>
    %c-2073254261_i32 = arith.constant -2073254261 : i32
    %24 = vector.broadcast %c-2073254261_i32 : i32 to vector<4x128xi32>
    %25 = arith.muli %23, %24 : vector<4x128xi32>
    %c1073741824_i32 = arith.constant 1073741824 : i32
    %26 = vector.broadcast %c1073741824_i32 : i32 to vector<4x128xi32>
    %27 = arith.cmpi uge, %25, %26 : vector<4x128xi32>
    %c0_1 = arith.constant 0 : index
    %c0_2 = arith.constant 0 : index
    %28 = vector.load %arg2[%c0_1, %c0_2] : memref<4x128xf32, #tpu.memory_space<vmem>>, vector<4x128xf32>
    %cst = arith.constant 0.000000e+00 : f32
    %29 = vector.broadcast %cst : f32 to vector<4x128xf32>
    %30 = arith.select %27, %28, %29 : vector<4x128xi1>, vector<4x128xf32>
    %c0_3 = arith.constant 0 : index
    %c0_4 = arith.constant 0 : index
    %31 = vector.load %arg3[%c0_3, %c0_4] : memref<4x128xf32, #tpu.memory_space<vmem>>, vector<4x128xf32>
    tpu.vector_store %arg3[%c0_3, %c0_4], %30 {strides = array<i32>} : memref<4x128xf32, #tpu.memory_space<vmem>>, vector<4x128xf32>,
    return
  }
  func.func @transform_0(%arg0: i32) -> i32 {
    %c0_i32 = arith.constant 0 : i32
    %c0_i32_0 = arith.constant 0 : i32
    return %c0_i32 : i32
  }
  func.func @transform_1(%arg0: i32) -> (i32, i32) {
    %c0_i32 = arith.constant 0 : i32
    %c0_i32_0 = arith.constant 0 : i32
    return %arg0, %c0_i32 : i32, i32
  }
  func.func @transform_2(%arg0: i32) -> (i32, i32) {
    %c0_i32 = arith.constant 0 : i32
    %c0_i32_0 = arith.constant 0 : i32
    return %arg0, %c0_i32 : i32, i32
  }
}

</mosaic_0001>

<bundles_post_ra>
// kernel: tpu_custom_call.1
= control target key start
LH: loop header
LB: loop body
LE: loop exit
PB: predicated region body
PF: predicated region fallthrough
CT: control target
= control target key end

     0   :  { %8 = vsyncpa [#allocation4], 0  ;;  %s152_s0 = inlined_call_operand.<no memory space> [shape: s32[1], index: 0, kind: input, shape index: {}]   ;;  %s153_s1 = inlined_call_operand.hbm [shape: f32[4,128], index: 1, kind: input, shape index: {}]   ;;  %s154_s2 = inlined_call_operand.hbm [shape: f32[4,128], index: 2, kind: output, shape index: {}]  }
   0x1   :  { %9 = vsyncpa [#allocation5], 0  ;;  %s17_s11 = sshll.u32 %s153_s1, 4  ;;  %s126_s12 = smov [#allocation3]   ;;  %s18_s11 = int_to_ptr.hbm [resolvable:$true] %s17_s11 }
   0x2   :  { %s19_s13 = sshll.u32 %s126_s12, 4  ;;  %s20_s13 = int_to_ptr.vmem [resolvable:$true] %s19_s13 }
   0x3   :  { %22 = dma.hbm_to_vmem [thread:$0]  %s18_s11, 64, %s20_s13, [#allocation4]  }
   0x4   :  { %122 = dma.done.wait [#allocation4], 64  }
   0x5   :  { %123 = vsyncadd [#allocation4], 4294967232  ;;  %v29_v0 = vlaneseq  ;;  %s39_s16 = smul.u32 2246822519, %s152_s0  ;;  %s127_s1 = smov [#allocation6]  }
   0x6   :  { %s59_s17 = sshll.u32 %s127_s1, 4  ;;  %s61_s20 = sshll.u32 %s154_s2, 4  ;;  %v51_v16 = vld [vmem:[#allocation3] sm:$0xf]  ;;  %s60_s17 = int_to_ptr.vmem [resolvable:$true] %s59_s17  ;;  %s62_s20 = int_to_ptr.hbm [resolvable:$true] %s61_s20 }
   0x7   :  { %v30_v1 = vshrl.u32 %v29_v0, 7  ;;  %v34_v2 = vand.u32 127, %v29_v0  ;;  %v40_v6 = vstv %s39_s16 }
   0x9   :  { %v35_v3 = vshra.s32 %v34_v2, 5  ;;  %v36_v4 = vmul.u32 4, %v30_v1 }
   0xb   :  { %v37_v5 = vadd.s32 %v36_v4, %v35_v3 }
   0xd   :  { %v38_v7 = vmul.u32 2654435761, %v37_v5 }
   0xf   :  { %v41_v8 = vadd.s32 %v40_v6, %v38_v7 }
  0x11   :  { %v42_v9 = vshrl.u32 %v41_v8, 16 }
  0x13   :  { %v43_v10 = vxor.u32 %v42_v9, %v41_v8 }
  0x15   :  { %v44_v11 = vmul.u32 2146121005, %v43_v10 }
  0x17   :  { %v45_v12 = vshrl.u32 %v44_v11, 15 }
  0x19   :  { %v46_v13 = vxor.u32 %v45_v12, %v44_v11 }
  0x1b   :  { %v47_v14 = vmul.u32 2221713035, %v46_v13 }
  0x1d   :  { %v71_v15 = vxor.u32 2147483648, %v47_v14 }
  0x1f   :  { %vm50_vm0 = vcmp.ge.s32.totalorder %v71_v15, 3221225472 }
  0x20   :  { %v52_v17 = vsel %vm50_vm0, %v51_v16, 0.0 }
  0x21   :  { %53 = vst [vmem:[#allocation6] sm:$0xf] %v52_v17 }
  0x22   :  { %64 = dma.vmem_to_hbm [thread:$0]  %s60_s17, 64, %s62_s20, [#allocation5]  }
  0x23   :  { %124 = dma.done.wait [#allocation5], 64  }
  0x24   :  { %125 = vsyncadd [#allocation5], 4294967232 }
  0x25   :  { %69 = vsyncpa [#allocation4], 1 }
  0x26   :  { %70 = vsyncpa [#allocation5], 1 }

</bundles_post_ra>
